<compile_context>
chip_gen: v7x
topology: tpu7x:2x2x1
jax: 0.10.0
libtpu: 0.0.40
codegen_flags: <defaults>
</compile_context>

<pallas_src>
import functools

import numpy as np
import jax
import jax.numpy as jnp
from jax.experimental import pallas as pl
from jax.experimental.pallas import tpu as pltpu


# ----------------------------------------------------------------------------
# Conv (3x3, pad 1) + ReLU  [+ fused 1x1 side conv + sigmoid]  Pallas kernel
# ----------------------------------------------------------------------------
def _make_conv_kernel(TH, W, Cin, Cout, *, store_act, with_side):
    def kernel(*refs):
        x_ref, w_ref, b_ref = refs[0], refs[1], refs[2]
        i = 3
        sw_ref = sb_ref = None
        if with_side:
            sw_ref, sb_ref = refs[i], refs[i + 1]
            i += 2
        outs = refs[i:]
        oi = 0
        act_ref = None
        if store_act:
            act_ref = outs[oi]
            oi += 1
        side_ref = outs[oi] if with_side else None

        x = x_ref[0]                                    # (TH+2, W+2, Cin) bf16
        # In-VMEM im2col: 9 shifted-slice matmuls accumulated in f32.
        # Hoist column slices: one per dx, row shifts are aligned sublane
        # offsets of the flattened (TH+2)*W buffer.
        acc = jnp.zeros((TH * W, Cout), jnp.float32)
        for dx in range(3):
            xc = x[:, dx:dx + W, :].reshape((TH + 2) * W, Cin)
            for dy in range(3):
                xs = xc[dy * W:dy * W + TH * W, :]
                acc = acc + jnp.dot(xs, w_ref[dy, dx],
                                    preferred_element_type=jnp.float32)
        h = jnp.maximum(acc + b_ref[...], 0.0)          # (TH*W, Cout) f32
        h3 = h.reshape(TH, W, Cout)

        if store_act:
            act_ref[0] = h3.astype(act_ref.dtype)       # bf16 activation out

        if with_side:
            # Fused 1x1 side conv + sigmoid: VPU multiply + lane reduce.
            s = jnp.sum(h3 * sw_ref[...], axis=-1) + sb_ref[...]
            side_ref[0] = jax.nn.sigmoid(s)
    return kernel


def _pick_tile_h(H, W, cin, cout, budget_bytes=6 << 20):
    """Largest row-tile (multiple of 8, divides H) fitting a VMEM budget.

    Prefers >=2 tiles per image so the row axis gives extra parallel grid
    steps (helps v7x's 2 TensorCores).  Budget is per block set; the pipeline
    double-buffers, so keep it well under the scoped VMEM limit
    (16 MiB default on v5e, 32 MiB on v6e/v7x).
    """
    cands = [th for th in range(8, H + 1, 8) if H % th == 0] or [H]

    def fits(th):
        xin = (th + 2) * (W + 2) * cin * 2              # bf16 halo input block
        out = th * W * cout * 2 + th * W * 4            # bf16 act + f32 side
        return 2 * (xin + out) <= budget_bytes          # double buffered

    fitting = [th for th in cands if fits(th)] or [cands[0]]
    multi = [th for th in fitting if H // th >= 2]
    return max(multi) if multi else max(fitting)


def conv3x3_block(x, w, b, side=None, store_act=True):
    """3x3 conv (pad=1) + ReLU, optionally fused 1x1 side conv + sigmoid.

    x: (B,H,W,Cin) bf16;  w: (3,3,Cin,Cout) f32;  b: (Cout,) f32
    side: optional (sw (Cout,1), sb (1,1)) f32.
    store_act=False skips writing the main activation (side-only epilogue).
    Returns (h_bf16 (B,H,W,Cout) or None, side_f32 (B,H,W) or None).
    """
    x = x.astype(jnp.bfloat16)
    B, H, W, Cin = x.shape
    Cout = w.shape[-1]

    # Pad tiny channel counts (conv1_1: Cin=3) to 8 for MXU/sublane alignment.
    if Cin < 8:
        pad_c = 8 - Cin
        x = jnp.pad(x, ((0, 0), (0, 0), (0, 0), (0, pad_c)))
        w = jnp.pad(w, ((0, 0), (0, 0), (0, pad_c), (0, 0)))
        Cin = 8

    TH = _pick_tile_h(H, W, Cin, Cout)
    T = H // TH

    # Zero-pad spatially, then build halo'd row tiles.  When a single tile
    # covers the whole image (T == 1) no extra HBM copy is needed; otherwise
    # only 2 halo rows per tile are duplicated.
    xp = jnp.pad(x, ((0, 0), (1, 1), (1, 1), (0, 0)))   # (B, H+2, W+2, Cin)
    if T == 1:
        tiles = xp                                      # (B, H+2, W+2, Cin)
    else:
        tiles = jnp.stack([xp[:, t * TH:t * TH + TH + 2] for t in range(T)],
                          axis=1).reshape(B * T, TH + 2, W + 2, Cin)

    wf = w.astype(jnp.bfloat16)                         # (3,3,Cin,Cout)
    bf = b.reshape(1, Cout).astype(jnp.float32)

    in_specs = [
        pl.BlockSpec((1, TH + 2, W + 2, Cin),
                     lambda bi, ti, T=T: (bi * T + ti, 0, 0, 0)),
        pl.BlockSpec((3, 3, Cin, Cout), lambda bi, ti: (0, 0, 0, 0)),
        pl.BlockSpec((1, Cout), lambda bi, ti: (0, 0)),
    ]
    args = [tiles, wf, bf]

    with_side = side is not None
    if with_side:
        sw, sb = side
        args += [sw.reshape(1, 1, Cout).astype(jnp.float32),
                 sb.reshape(1, 1).astype(jnp.float32)]
        in_specs += [pl.BlockSpec((1, 1, Cout), lambda bi, ti: (0, 0, 0)),
                     pl.BlockSpec((1, 1), lambda bi, ti: (0, 0))]

    out_shapes = []
    out_specs = []
    if store_act:
        out_shapes.append(jax.ShapeDtypeStruct((B, H, W, Cout), jnp.bfloat16))
        out_specs.append(pl.BlockSpec((1, TH, W, Cout),
                                      lambda bi, ti: (bi, ti, 0, 0)))
    if with_side:
        out_shapes.append(jax.ShapeDtypeStruct((B, H, W), jnp.float32))
        out_specs.append(pl.BlockSpec((1, TH, W), lambda bi, ti: (bi, ti, 0)))

    res = pl.pallas_call(
        _make_conv_kernel(TH, W, Cin, Cout,
                          store_act=store_act, with_side=with_side),
        out_shape=tuple(out_shapes),
        grid=(B, T),
        in_specs=in_specs,
        out_specs=tuple(out_specs),
        compiler_params=pltpu.CompilerParams(
            dimension_semantics=("parallel", "parallel")),
    )(*args)

    if not isinstance(res, (tuple, list)):
        res = (res,)
    act = None
    side_out = None
    idx = 0
    if store_act:
        act = res[idx]
        idx += 1
    if with_side:
        side_out = res[idx]
    return act, side_out


def maxpool2(x):
    """2x2 max pool, stride 2, NHWC.  Plain JAX glue (see TODO above)."""
    B, H, W, C = x.shape
    return x.reshape(B, H // 2, 2, W // 2, 2, C).max(axis=(2, 4))


# ----------------------------------------------------------------------------
# Upsample (bilinear, align_corners=True) + weighted fusion Pallas kernel
# ----------------------------------------------------------------------------
@functools.lru_cache(maxsize=None)
def _interp_matrix(out_size, in_size):
    """1-D linear interpolation matrix, align_corners=True (as in the module)."""
    A = np.zeros((out_size, in_size), np.float32)
    if in_size == 1:
        A[:, 0] = 1.0
        return A
    for i in range(out_size):
        src = i * (in_size - 1) / (out_size - 1) if out_size > 1 else 0.0
        lo = min(int(np.floor(src)), in_size - 2)
        frac = src - lo
        A[i, lo] += 1.0 - frac
        A[i, lo + 1] += frac
    return A


def _make_fuse_kernel(w1, w2, w3):
    def kernel(s1_ref, s2_ref, s3_ref, a2r_ref, a2c_ref, a3r_ref, a3c_ref, o_ref):
        # up = A_rows @ img @ A_cols^T  (separable bilinear, align_corners=True)
        up2 = jnp.dot(a2r_ref[...], s2_ref[0], preferred_element_type=jnp.float32)
        up2 = jax.lax.dot_general(up2, a2c_ref[...],
                                  dimension_numbers=(((1,), (1,)), ((), ())),
                                  preferred_element_type=jnp.float32)
        up3 = jnp.dot(a3r_ref[...], s3_ref[0], preferred_element_type=jnp.float32)
        up3 = jax.lax.dot_general(up3, a3c_ref[...],
                                  dimension_numbers=(((1,), (1,)), ((), ())),
                                  preferred_element_type=jnp.float32)
        o_ref[0] = w1 * s1_ref[0] + w2 * up2 + w3 * up3
    return kernel


def fuse_sides(side1, side2, side3, fusion_weights):
    """side1:(B,H,W) side2:(B,H2,W2) side3:(B,H3,W3) -> (B,H,W)."""
    B, H, W = side1.shape
    H2, W2 = side2.shape[1:]
    H3, W3 = side3.shape[1:]
    a2r = jnp.asarray(_interp_matrix(H, H2))
    a2c = jnp.asarray(_interp_matrix(W, W2))
    a3r = jnp.asarray(_interp_matrix(H, H3))
    a3c = jnp.asarray(_interp_matrix(W, W3))
    w1, w2, w3 = (float(v) for v in fusion_weights)
    return pl.pallas_call(
        _make_fuse_kernel(w1, w2, w3),
        out_shape=jax.ShapeDtypeStruct((B, H, W), jnp.float32),
        grid=(B,),
        in_specs=[
            pl.BlockSpec((1, H, W), lambda i: (i, 0, 0)),
            pl.BlockSpec((1, H2, W2), lambda i: (i, 0, 0)),
            pl.BlockSpec((1, H3, W3), lambda i: (i, 0, 0)),
            pl.BlockSpec((H, H2), lambda i: (0, 0)),
            pl.BlockSpec((W, W2), lambda i: (0, 0)),
            pl.BlockSpec((H, H3), lambda i: (0, 0)),
            pl.BlockSpec((W, W3), lambda i: (0, 0)),
        ],
        out_specs=pl.BlockSpec((1, H, W), lambda i: (i, 0, 0)),
        compiler_params=pltpu.CompilerParams(dimension_semantics=("parallel",)),
    )(side1, side2, side3, a2r, a2c, a3r, a3c)


# ----------------------------------------------------------------------------
# Parameter init + forward pass
# ----------------------------------------------------------------------------
def init_params(key):
    # TODO(synk): the original module copies pretrained VGG16 weights; random
    # init with the same shapes is used here.
    def conv_init(k, kh, kw, cin, cout):
        kw_, kb_ = jax.random.split(k)
        w = jax.random.normal(kw_, (kh, kw, cin, cout), jnp.float32) * 0.05
        b = jax.random.normal(kb_, (cout,), jnp.float32) * 0.05
        return w, b

    names_shapes = [
        ("conv1_1", 3, 64), ("conv1_2", 64, 64),
        ("conv2_1", 64, 128), ("conv2_2", 128, 128),
        ("conv3_1", 128, 256), ("conv3_2", 256, 256), ("conv3_3", 256, 256),
    ]
    keys = jax.random.split(key, len(names_shapes) + 3)
    params = {}
    for k, (name, cin, cout) in zip(keys[:len(names_shapes)], names_shapes):
        params[name] = conv_init(k, 3, 3, cin, cout)
    for k, (name, cin) in zip(keys[len(names_shapes):],
                              [("side1", 64), ("side2", 128), ("side3", 256)]):
        w, b = conv_init(k, 1, 1, cin, 1)
        params[name] = (w.reshape(cin, 1), b.reshape(1, 1))
    return params


def cdws_forward(x_nchw, params, fusion_weights=(0.2, 0.35, 0.45)):
    x = jnp.transpose(x_nchw, (0, 2, 3, 1)).astype(jnp.bfloat16)  # NCHW -> NHWC

    h, _ = conv3x3_block(x, *params["conv1_1"])
    h, side1 = conv3x3_block(h, *params["conv1_2"], side=params["side1"])

    h = maxpool2(h)
    h, _ = conv3x3_block(h, *params["conv2_1"])
    h, side2 = conv3x3_block(h, *params["conv2_2"], side=params["side2"])

    h = maxpool2(h)
    h, _ = conv3x3_block(h, *params["conv3_1"])
    h, _ = conv3x3_block(h, *params["conv3_2"])
    # conv3_3's 256-ch activation is only consumed by the side conv -> skip
    # the HBM writeback entirely.
    _, side3 = conv3x3_block(h, *params["conv3_3"], side=params["side3"],
                             store_act=False)

    return fuse_sides(side1, side2, side3, fusion_weights)   # (B, H, W) f32


if __name__ == "__main__":
    key = jax.random.PRNGKey(0)
    kx, kp = jax.random.split(key)
    x = jax.random.normal(kx, (2, 3, 16, 16), jnp.float32)    # NCHW like PyTorch
    params = init_params(kp)

    out = cdws_forward(x, params, fusion_weights=(0.2, 0.35, 0.45))
    out = jax.block_until_ready(out)
    assert out.shape == (2, 16, 16), out.shape
    assert bool(jnp.all(jnp.isfinite(out)))
    print("KERNEL_OK")
</pallas_src>

<mosaic_0001>
module attributes {stable_mosaic.version = 11 : i64} {
  func.func @kernel(%arg0: i32, %arg1: i32, %arg2: memref<1x10x18x8xbf16, #tpu.memory_space<vmem>>, %arg3: memref<3x3x8x64xbf16, #tpu.memory_space<vmem>>, %arg4: memref<1x64xf32, #tpu.memory_space<vmem>>, %arg5: memref<1x8x16x64xbf16, #tpu.memory_space<vmem>>) attributes {dimension_semantics = [#tpu.dimension_semantics<parallel>, #tpu.dimension_semantics<parallel>], iteration_bounds = array<i64: 2, 2>, scalar_prefetch = 0 : i64, scratch_operands = 0 : i64, tpu.core_type = #tpu.core_type<tc>, window_params = [{transform_indices = @transform_0, window_bounds = array<i64: 1, 10, 18, 8>}, {pipeline_mode = #tpu.pipeline_mode<synchronous>, transform_indices = @transform_1, window_bounds = array<i64: 3, 3, 8, 64>}, {pipeline_mode = #tpu.pipeline_mode<synchronous>, transform_indices = @transform_2, window_bounds = array<i64: 1, 64>}, {transform_indices = @transform_3, window_bounds = array<i64: 1, 8, 16, 64>}]} {
    %c0 = arith.constant 0 : index
    %c0_0 = arith.constant 0 : index
    %c0_1 = arith.constant 0 : index
    %c0_2 = arith.constant 0 : index
    %0 = vector.load %arg2[%c0, %c0_0, %c0_1, %c0_2] : memref<1x10x18x8xbf16, #tpu.memory_space<vmem>>, vector<1x10x18x8xbf16>
    %1 = vector.shape_cast %0 : vector<1x10x18x8xbf16> to vector<10x18x8xbf16>
    %cst = arith.constant 0.000000e+00 : f32
    %2 = vector.broadcast %cst : f32 to vector<128x64xf32>
    %3 = vector.extract_strided_slice %1 {offsets = [0, 0, 0], sizes = [10, 16, 8], strides = [1, 1, 1]} : vector<10x18x8xbf16> to vector<10x16x8xbf16>
    %4 = vector.shape_cast %3 : vector<10x16x8xbf16> to vector<160x8xbf16>
    %5 = vector.extract_strided_slice %4 {offsets = [0, 0], sizes = [128, 8], strides = [1, 1]} : vector<160x8xbf16> to vector<128x8xbf16>
    %c0_3 = arith.constant 0 : index
    %c0_4 = arith.constant 0 : index
    %c0_5 = arith.constant 0 : index
    %c0_6 = arith.constant 0 : index
    %6 = vector.load %arg3[%c0_3, %c0_4, %c0_5, %c0_6] : memref<3x3x8x64xbf16, #tpu.memory_space<vmem>>, vector<1x1x8x64xbf16>
    %7 = vector.shape_cast %6 : vector<1x1x8x64xbf16> to vector<8x64xbf16>
    %cst_7 = arith.constant dense<0.000000e+00> : vector<128x64xf32>
    %8 = tpu.matmul %5, %7, %cst_7 {dimension_numbers = #tpu.dot_dimension_numbers<[1], [0], [0], [1], [0, 0, 1, 1], [], []>} : vector<128x8xbf16>, vector<8x64xbf16>, vector<128x64xf32> -> vector<128x64xf32>
    %9 = arith.addf %2, %8 : vector<128x64xf32>
    %10 = vector.extract_strided_slice %4 {offsets = [16, 0], sizes = [128, 8], strides = [1, 1]} : vector<160x8xbf16> to vector<128x8xbf16>
    %c1 = arith.constant 1 : index
    %c0_8 = arith.constant 0 : index
    %c0_9 = arith.constant 0 : index
    %c0_10 = arith.constant 0 : index
    %11 = vector.load %arg3[%c1, %c0_8, %c0_9, %c0_10] : memref<3x3x8x64xbf16, #tpu.memory_space<vmem>>, vector<1x1x8x64xbf16>
    %12 = vector.shape_cast %11 : vector<1x1x8x64xbf16> to vector<8x64xbf16>
    %cst_11 = arith.constant dense<0.000000e+00> : vector<128x64xf32>
    %13 = tpu.matmul %10, %12, %cst_11 {dimension_numbers = #tpu.dot_dimension_numbers<[1], [0], [0], [1], [0, 0, 1, 1], [], []>} : vector<128x8xbf16>, vector<8x64xbf16>, vector<128x64xf32> -> vector<128x64xf32>
    %14 = arith.addf %9, %13 : vector<128x64xf32>
    %15 = vector.extract_strided_slice %4 {offsets = [32, 0], sizes = [128, 8], strides = [1, 1]} : vector<160x8xbf16> to vector<128x8xbf16>
    %c2 = arith.constant 2 : index
    %c0_12 = arith.constant 0 : index
    %c0_13 = arith.constant 0 : index
    %c0_14 = arith.constant 0 : index
    %16 = vector.load %arg3[%c2, %c0_12, %c0_13, %c0_14] : memref<3x3x8x64xbf16, #tpu.memory_space<vmem>>, vector<1x1x8x64xbf16>
    %17 = vector.shape_cast %16 : vector<1x1x8x64xbf16> to vector<8x64xbf16>
    %cst_15 = arith.constant dense<0.000000e+00> : vector<128x64xf32>
    %18 = tpu.matmul %15, %17, %cst_15 {dimension_numbers = #tpu.dot_dimension_numbers<[1], [0], [0], [1], [0, 0, 1, 1], [], []>} : vector<128x8xbf16>, vector<8x64xbf16>, vector<128x64xf32> -> vector<128x64xf32>
    %19 = arith.addf %14, %18 : vector<128x64xf32>
    %20 = vector.extract_strided_slice %1 {offsets = [0, 1, 0], sizes = [10, 16, 8], strides = [1, 1, 1]} : vector<10x18x8xbf16> to vector<10x16x8xbf16>
    %21 = vector.shape_cast %20 : vector<10x16x8xbf16> to vector<160x8xbf16>
    %22 = vector.extract_strided_slice %21 {offsets = [0, 0], sizes = [128, 8], strides = [1, 1]} : vector<160x8xbf16> to vector<128x8xbf16>
    %c0_16 = arith.constant 0 : index
    %c1_17 = arith.constant 1 : index
    %c0_18 = arith.constant 0 : index
    %c0_19 = arith.constant 0 : index
    %23 = vector.load %arg3[%c0_16, %c1_17, %c0_18, %c0_19] : memref<3x3x8x64xbf16, #tpu.memory_space<vmem>>, vector<1x1x8x64xbf16>
    %24 = vector.shape_cast %23 : vector<1x1x8x64xbf16> to vector<8x64xbf16>
    %cst_20 = arith.constant dense<0.000000e+00> : vector<128x64xf32>
    %25 = tpu.matmul %22, %24, %cst_20 {dimension_numbers = #tpu.dot_dimension_numbers<[1], [0], [0], [1], [0, 0, 1, 1], [], []>} : vector<128x8xbf16>, vector<8x64xbf16>, vector<128x64xf32> -> vector<128x64xf32>
    %26 = arith.addf %19, %25 : vector<128x64xf32>
    %27 = vector.extract_strided_slice %21 {offsets = [16, 0], sizes = [128, 8], strides = [1, 1]} : vector<160x8xbf16> to vector<128x8xbf16>
    %c1_21 = arith.constant 1 : index
    %c1_22 = arith.constant 1 : index
    %c0_23 = arith.constant 0 : index
    %c0_24 = arith.constant 0 : index
    %28 = vector.load %arg3[%c1_21, %c1_22, %c0_23, %c0_24] : memref<3x3x8x64xbf16, #tpu.memory_space<vmem>>, vector<1x1x8x64xbf16>
    %29 = vector.shape_cast %28 : vector<1x1x8x64xbf16> to vector<8x64xbf16>
    %cst_25 = arith.constant dense<0.000000e+00> : vector<128x64xf32>
    %30 = tpu.matmul %27, %29, %cst_25 {dimension_numbers = #tpu.dot_dimension_numbers<[1], [0], [0], [1], [0, 0, 1, 1], [], []>} : vector<128x8xbf16>, vector<8x64xbf16>, vector<128x64xf32> -> vector<128x64xf32>
    %31 = arith.addf %26, %30 : vector<128x64xf32>
    %32 = vector.extract_strided_slice %21 {offsets = [32, 0], sizes = [128, 8], strides = [1, 1]} : vector<160x8xbf16> to vector<128x8xbf16>
    %c2_26 = arith.constant 2 : index
    %c1_27 = arith.constant 1 : index
    %c0_28 = arith.constant 0 : index
    %c0_29 = arith.constant 0 : index
    %33 = vector.load %arg3[%c2_26, %c1_27, %c0_28, %c0_29] : memref<3x3x8x64xbf16, #tpu.memory_space<vmem>>, vector<1x1x8x64xbf16>
    %34 = vector.shape_cast %33 : vector<1x1x8x64xbf16> to vector<8x64xbf16>
    %cst_30 = arith.constant dense<0.000000e+00> : vector<128x64xf32>
    %35 = tpu.matmul %32, %34, %cst_30 {dimension_numbers = #tpu.dot_dimension_numbers<[1], [0], [0], [1], [0, 0, 1, 1], [], []>} : vector<128x8xbf16>, vector<8x64xbf16>, vector<128x64xf32> -> vector<128x64xf32>
    %36 = arith.addf %31, %35 : vector<128x64xf32>
    %37 = vector.extract_strided_slice %1 {offsets = [0, 2, 0], sizes = [10, 16, 8], strides = [1, 1, 1]} : vector<10x18x8xbf16> to vector<10x16x8xbf16>
    %38 = vector.shape_cast %37 : vector<10x16x8xbf16> to vector<160x8xbf16>
    %39 = vector.extract_strided_slice %38 {offsets = [0, 0], sizes = [128, 8], strides = [1, 1]} : vector<160x8xbf16> to vector<128x8xbf16>
    %c0_31 = arith.constant 0 : index
    %c2_32 = arith.constant 2 : index
    %c0_33 = arith.constant 0 : index
    %c0_34 = arith.constant 0 : index
    %40 = vector.load %arg3[%c0_31, %c2_32, %c0_33, %c0_34] : memref<3x3x8x64xbf16, #tpu.memory_space<vmem>>, vector<1x1x8x64xbf16>
    %41 = vector.shape_cast %40 : vector<1x1x8x64xbf16> to vector<8x64xbf16>
    %cst_35 = arith.constant dense<0.000000e+00> : vector<128x64xf32>
    %42 = tpu.matmul %39, %41, %cst_35 {dimension_numbers = #tpu.dot_dimension_numbers<[1], [0], [0], [1], [0, 0, 1, 1], [], []>} : vector<128x8xbf16>, vector<8x64xbf16>, vector<128x64xf32> -> vector<128x64xf32>
    %43 = arith.addf %36, %42 : vector<128x64xf32>
    %44 = vector.extract_strided_slice %38 {offsets = [16, 0], sizes = [128, 8], strides = [1, 1]} : vector<160x8xbf16> to vector<128x8xbf16>
    %c1_36 = arith.constant 1 : index
    %c2_37 = arith.constant 2 : index
    %c0_38 = arith.constant 0 : index
    %c0_39 = arith.constant 0 : index
    %45 = vector.load %arg3[%c1_36, %c2_37, %c0_38, %c0_39] : memref<3x3x8x64xbf16, #tpu.memory_space<vmem>>, vector<1x1x8x64xbf16>
    %46 = vector.shape_cast %45 : vector<1x1x8x64xbf16> to vector<8x64xbf16>
    %cst_40 = arith.constant dense<0.000000e+00> : vector<128x64xf32>
    %47 = tpu.matmul %44, %46, %cst_40 {dimension_numbers = #tpu.dot_dimension_numbers<[1], [0], [0], [1], [0, 0, 1, 1], [], []>} : vector<128x8xbf16>, vector<8x64xbf16>, vector<128x64xf32> -> vector<128x64xf32>
    %48 = arith.addf %43, %47 : vector<128x64xf32>
    %49 = vector.extract_strided_slice %38 {offsets = [32, 0], sizes = [128, 8], strides = [1, 1]} : vector<160x8xbf16> to vector<128x8xbf16>
    %c2_41 = arith.constant 2 : index
    %c2_42 = arith.constant 2 : index
    %c0_43 = arith.constant 0 : index
    %c0_44 = arith.constant 0 : index
    %50 = vector.load %arg3[%c2_41, %c2_42, %c0_43, %c0_44] : memref<3x3x8x64xbf16, #tpu.memory_space<vmem>>, vector<1x1x8x64xbf16>
    %51 = vector.shape_cast %50 : vector<1x1x8x64xbf16> to vector<8x64xbf16>
    %cst_45 = arith.constant dense<0.000000e+00> : vector<128x64xf32>
    %52 = tpu.matmul %49, %51, %cst_45 {dimension_numbers = #tpu.dot_dimension_numbers<[1], [0], [0], [1], [0, 0, 1, 1], [], []>} : vector<128x8xbf16>, vector<8x64xbf16>, vector<128x64xf32> -> vector<128x64xf32>
    %53 = arith.addf %48, %52 : vector<128x64xf32>
    %c0_46 = arith.constant 0 : index
    %c0_47 = arith.constant 0 : index
    %54 = vector.load %arg4[%c0_46, %c0_47] : memref<1x64xf32, #tpu.memory_space<vmem>>, vector<1x64xf32>
    %55 = vector.broadcast %54 : vector<1x64xf32> to vector<128x64xf32>
    %56 = arith.addf %53, %55 : vector<128x64xf32>
    %cst_48 = arith.constant 0.000000e+00 : f32
    %57 = vector.broadcast %cst_48 : f32 to vector<128x64xf32>
    %58 = arith.maximumf %56, %57 : vector<128x64xf32>
    %59 = vector.shape_cast %58 : vector<128x64xf32> to vector<8x16x64xf32>
    %60 = arith.truncf %59 : vector<8x16x64xf32> to vector<8x16x64xbf16>
    %c0_49 = arith.constant 0 : index
    %c0_50 = arith.constant 0 : index
    %c0_51 = arith.constant 0 : index
    %c0_52 = arith.constant 0 : index
    %61 = vector.load %arg5[%c0_49, %c0_50, %c0_51, %c0_52] : memref<1x8x16x64xbf16, #tpu.memory_space<vmem>>, vector<1x8x16x64xbf16>
    %62 = vector.shape_cast %61 : vector<1x8x16x64xbf16> to vector<8x16x64xbf16>
    %63 = vector.shape_cast %60 : vector<8x16x64xbf16> to vector<1x8x16x64xbf16>
    tpu.vector_store %arg5[%c0_49, %c0_50, %c0_51, %c0_52], %63 {strides = array<i32>} : memref<1x8x16x64xbf16, #tpu.memory_space<vmem>>, vector<1x8x16x64xbf16>,
    return
  }
  func.func @transform_0(%arg0: i32, %arg1: i32) -> (i32, i32, i32, i32) {
    %c2_i32 = arith.constant 2 : i32
    %0 = arith.muli %arg0, %c2_i32 : i32
    %1 = arith.addi %0, %arg1 : i32
    %c0_i32 = arith.constant 0 : i32
    %c0_i32_0 = arith.constant 0 : i32
    %c0_i32_1 = arith.constant 0 : i32
    %c0_i32_2 = arith.constant 0 : i32
    return %1, %c0_i32, %c0_i32_0, %c0_i32_1 : i32, i32, i32, i32
  }
  func.func @transform_1(%arg0: i32, %arg1: i32) -> (i32, i32, i32, i32) {
    %c0_i32 = arith.constant 0 : i32
    %c0_i32_0 = arith.constant 0 : i32
    %c0_i32_1 = arith.constant 0 : i32
    %c0_i32_2 = arith.constant 0 : i32
    %c0_i32_3 = arith.constant 0 : i32
    return %c0_i32, %c0_i32_0, %c0_i32_1, %c0_i32_2 : i32, i32, i32, i32
  }
  func.func @transform_2(%arg0: i32, %arg1: i32) -> (i32, i32) {
    %c0_i32 = arith.constant 0 : i32
    %c0_i32_0 = arith.constant 0 : i32
    %c0_i32_1 = arith.constant 0 : i32
    return %c0_i32, %c0_i32_0 : i32, i32
  }
  func.func @transform_3(%arg0: i32, %arg1: i32) -> (i32, i32, i32, i32) {
    %c0_i32 = arith.constant 0 : i32
    %c0_i32_0 = arith.constant 0 : i32
    %c0_i32_1 = arith.constant 0 : i32
    return %arg0, %arg1, %c0_i32, %c0_i32_0 : i32, i32, i32, i32
  }
}

</mosaic_0001>

<bundles_post_ra>
// kernel: tpu_custom_call.1
= control target key start
LH: loop header
LB: loop body
LE: loop exit
PB: predicated region body
PF: predicated region fallthrough
CT: control target
= control target key end

     0   :  { %8 = vsyncpa [#allocation3], 0  ;;  %s3501_s0 = inlined_call_operand.vmem [shape: bf16[4,10,18,8], index: 0, kind: input, shape index: {}]   ;;  %s3502_s1 = inlined_call_operand.vmem [shape: bf16[3,3,8,64], index: 1, kind: input, shape index: {}]   ;;  %s3503_s2 = inlined_call_operand.vmem [shape: f32[1,64], index: 2, kind: input, shape index: {}]   ;;  %s3504_s3 = inlined_call_operand.hbm [shape: bf16[2,16,16,64], index: 3, kind: output, shape index: {}]  }
   0x1   :  { %10 = vsyncpa [#allocation3 + $0x1], 0  ;;  %s2756_s12 = smov 0   ;;  %s2758_s13 = smov 0  }
   0x2   :  { %s2760_s14 = smov 0   ;;  %s2762_s15 = smov 0  }
   0x3   :  { %s2764_s16 = smov 0   ;;  %s2766_s17 = smov 0  }
   0x4   :  { %s2768_s18 = smov 0   ;;  %s2770_s19 = smov 0  }
   0x5 LB: > { %s1999_s20 = sadd.s32 4294967295, %s2731_s19   ;;  %s2000_s21 = sadd.s32 4294967294, %s2731_s19   ;;  %s2731_s19 = sphi %s2770_s19, %s16_s19   ;;  %s2727_s18 = sphi %s2768_s18, %s3538_s18   ;;  %s2723_s17 = sphi %s2766_s17, %s3537_s17   ;;  %s2719_s16 = sphi %s2764_s16, %s3536_s16   ;;  %s2715_s15 = sphi %s2762_s15, %s3535_s15   ;;  %s2711_s14 = sphi %s2760_s14, %s3534_s14   ;;  %s2707_s13 = sphi %s2758_s13, %s3533_s13   ;;  %s2703_s12 = sphi %s2756_s12, %s3532_s12  }
   0x6   : > { %s25_s22 = sadd.s32 1, %s2723_s17  ;;  %s28_s23 = sadd.s32 1, %s2727_s18 }
   0x7   : > { %p26_p0 = scmp.ge.s32.totalorder %s25_s22, 2  ;;  %p119_p1 = scmp.ne.s32.totalorder %s2711_s14, %s2707_s13 }
   0x8   : > { %p120_p2 = scmp.eq.s32.totalorder %s1999_s20, 3  ;;  %p125_p5 = scmp.ne.s32.totalorder %s2707_s13, %s2703_s12 }
   0x9   : > { %s3540_s22 = smov (%p26_p0, %s25_s22), 0  ;;  %s3542_s23 = smov (!%p26_p0, %s28_s23), %s2727_s18 }
   0xa   : > { %s105_s24 = ssub.s32 %s2723_s17, %s3540_s22  ;;  %p2807_p3 = por %p120_p2, %p119_p1 }
   0xb   : > { %p30_p4 = scmp.ge.s32.totalorder %s3542_s23, 2  ;;  %p126_p6 = scmp.eq.s32.totalorder %s2000_s21, 3 }
   0xc   : > { %p2005_p7 = scmp.ge.s32.totalorder %s2731_s19, 1  ;;  %p162_p9 = scmp.lt.s32.totalorder %s2731_s19, 5 }
   0xd   : > { %s3544_s23 = smov (%p30_p4, %s3542_s23), 0  ;;  %p2816_p8 = por %p126_p6, %p125_p5 }
   0xe   : > { %s104_s27 = ssub.s32 %s2727_s18, %s3544_s23  ;;  %s109_s28 = sadd.s32 1, %s2711_s14 }
   0xf   : > { %s106_s29 = sor.u32 %s105_s24, %s104_s27  ;;  %p163_p10 = pnand %p2005_p7, %p162_p9 }
  0x10   : > { %p107_p11 = scmp.eq.s32.totalorder %s106_s29, 0 }
  0x11   : > { %166 = sbr.rel (%p163_p10) target bundleno = 425 (0x1a9), region = 32 }
  0x12   : > { %s2825_s30 = scalar_select %p107_p11, %s2711_s14, %s109_s28  }
  0x18   : > { %v2009_v0 = vld [vmem:[%s3502_s1 + $0xc] sm:$0xf]  ;;  %vm297_vm0 = vcmask 1043456   ;;  %s2007_s6 = sshll.u32 %s2719_s16, 1  ;;  %v2837_v2 = vld [vmem:[%s3502_s1 + $0x10] sm:$0xf] }
  0x19   : > { %2543 = vmatprep.subr.msk.bf16.mxu1 %vm297_vm0, %v2009_v0  ;;  %v299_v1 = vsel %vm297_vm0, %v2009_v0, 0  ;;  %s189_s7 = sadd.s32 %s2715_s15, %s2007_s6  ;;  %v229_v3 = vld [vmem:[%s3502_s1] sm:$0xf]  ;;  %2547 = vmatprep.subr.msk.bf16.mxu0 %vm297_vm0, %v2837_v2  ;;  %v2846_v4 = vsel %vm297_vm0, %v2837_v2, 0  ;;  %v2853_v5 = vld [vmem:[%s3502_s1 + $0x1c] sm:$0xf] }
  0x1a   : > { %2252 = vmatpush3.bf16.msra.mxu1 %v299_v1  ;;  %p190_p12 = scmp.lt.s32.totalorder %s189_s7, 3  ;;  %3514 = vst [vmem:[#allocation5_spill] sm:$0xff] %v2846_v4  ;;  %2324 = vmatpush3.bf16.msra.mxu0 %v2846_v4  ;;  %vm272_vm1 = vcmask 64512   ;;  %vm632_vm2 = vsmask.f32 3328  ;;  %v407_v11 = vsel %vm297_vm0, %v229_v3, 0 }
  0x1b   : > { %2544 = vmatprep.subr.msk.bf16.mxu1 %vm297_vm0, %v229_v3  ;;  %2549 = vmatprep.subr.msk.bf16.mxu0 %vm297_vm0, %v2853_v5  ;;  %v2899_v20 = vld [vmem:[%s3502_s1 + $0x18] sm:$0xf]  ;;  %vm633_vm3 = vsmask.f32 7440  ;;  %v1174_v62 = vsel %vm297_vm0, %v2853_v5, 0  ;;  %vm1299_vm5 = vcmask 1042432  }
  0x1c   : > { %s3546_s7 = smov (!%p190_p12, %s189_s7), 3  ;;  %vm2942_vm4 = vmor %vm632_vm2, %vm633_vm3  ;;  %vm1300_vm6 = vcmask 1046532   ;;  %vm1889_vm8 = vcmask 519168   ;;  %s2169_s5 = sshll.u32 %s2715_s15, 4 }
  0x1d   : > { %s2553_s24 = smul.u32 120, %s3546_s7  ;;  %vm3166_vm7 = vmor %vm1299_vm5, %vm1300_vm6  ;;  %s2149_s6 = sshll.u32 %s2719_s16, 5 }
  0x1e   : > { %s1920_s15 = sadd.s32 %s2169_s5, %s2149_s6  ;;  %s2733_s21 = smov [#allocation2]  }
  0x1f   : > { %s2860_s29 = scalar_lea.vmem %s3501_s0, %s2553_s24  ;;  %s185_s24 = sand.u32 1, %s2707_s13  }
  0x20   : > { %v2863_v6 = vld [vmem:[%s2860_s29 + $0xc] sm:$0xf]  ;;  %v2866_v7 = vld [vmem:[%s2860_s29 + $0x10] sm:$0xf]  ;;  %v2869_v8 = vld [vmem:[%s2860_s29 + $0x18] sm:$0xf] }
  0x21   : > { %v2873_v9 = vcombine.low %v2863_v6, %v2866_v7  ;;  %v2876_v10 = vld [vmem:[%s2860_s29 + $0x1c] sm:$0xf]  ;;  %v660_v12 = vshrl.u32 %v2863_v6, 16  ;;  %v663_v13 = vshll.u32 %v2863_v6, 16  ;;  %v673_v14 = vshrl.u32 %v2866_v7, 16  ;;  %s2150_s16 = sshll.u32 %s1920_s15, 6 }
  0x22   : > { %v2884_v15 = vcombine.low %v2869_v8, %v2876_v10  ;;  %v2887_v16 = vld [vmem:[%s2860_s29 + $0x24] sm:$0xf]  ;;  %v684_v17 = vshrl.u32 %v2869_v8, 16  ;;  %v687_v18 = vshll.u32 %v2869_v8, 16  ;;  %v2894_v19 = vld [vmem:[%s2860_s29 + $0x28] sm:$0xf]  ;;  %s3437_s10 = scalar_lea.hbm %s3504_s3, %s2150_s16 }
  0x23   : > { %2253 = vmatprep.mubr.msk.bf16.mxu1 %vm272_vm1, %v2873_v9  ;;  %v697_v21 = vshrl.u32 %v2876_v10, 16  ;;  %v2906_v22 = vcombine.low %v2887_v16, %v2894_v19  ;;  %v2909_v23 = vld [vmem:[%s2860_s29 + $0x30] sm:$0xf]  ;;  %v2912_v24 = vld [vmem:[%s2860_s29 + $0x34] sm:$0xf]  ;;  %v708_v25 = vshrl.u32 %v2887_v16, 16 }
  0x24   : > { %2254 = vmatmul.mubr.msk.bf16.vlgmr.msra.gmra.mrb[0].mxu1 %vm272_vm1, %v2884_v15  ;;  %v2916_v26 = vld [vmem:[%s2860_s29 + $0x14] sm:$0x1]  ;;  %v662_v27 = vrot.slane %v660_v12, 4  ;;  %v665_v28 = vrot.slane %v663_v13, 5  ;;  %v669_v29 = vshll.u32 %v2866_v7, 16  ;;  %v675_v30 = vrot.slane %v673_v14, 4 }
  0x25   : > { %2270 = vmatpush3.bf16.msra.mxu1 %v407_v11  ;;  %2257 = vmatprep.mubr.msk.bf16.mxu1 %vm272_vm1, %v2906_v22  ;;  %v2922_v31 = vld [vmem:[%s2860_s29 + $0x20] sm:$0x1]  ;;  %v2928_v32 = vcombine.low %v2909_v23, %v2912_v24  ;;  %v679_v33 = vshll.u32 %v2916_v26, 16  ;;  %v686_v34 = vrot.slane %v684_v17, 4  ;;  %v689_v35 = vrot.slane %v687_v18, 5  ;;  %s3449_s11 = scalar_lea.sflag [#allocation3], %s185_s24 }
  0x26   : > { %2545 = vmatprep.subr.msk.bf16.mxu1 %vm297_vm0, %v2899_v20  ;;  %v2932_v36 = vld [vmem:[%s2860_s29 + $0x3c] sm:$0xf]  ;;  %v666_v37 = vor.u32 %v665_v28, %v662_v27  ;;  %v671_v38 = vrot.slane %v669_v29, 5  ;;  %v693_v39 = vshll.u32 %v2876_v10, 16  ;;  %v699_v40 = vrot.slane %v697_v21, 4  ;;  %s2641_s27 = sshll.u32 %s2733_s21, 4  ;;  %s2642_s27 = int_to_ptr.vmem [resolvable:$false] %s2641_s27 }
  0x27   : > { %v2936_v41 = vld [vmem:[%s2860_s29 + $0x40] sm:$0xf]  ;;  %v711_v42 = vshll.u32 %v2887_v16, 16  ;;  %v721_v43 = vshrl.u32 %v2894_v19, 16  ;;  %v690_v45 = vor.u32 %v689_v35, %v686_v34  ;;  %v703_v46 = vshll.u32 %v2922_v31, 16  ;;  %s2643_s28 = scalar_lea.vmem %s2642_s27, 2048 }
  0x28   : > { %v667_v47 = vrot.slane %v666_v37, 4  ;;  %v676_v48 = vor.u32 %v675_v30, %v671_v38  ;;  %v681_v49 = vrot.slane %v679_v33, 5  ;;  %v695_v50 = vrot.slane %v693_v39, 5  ;;  %v2953_v54 = vld [vmem:[%s2860_s29 + $0x48] sm:$0xf] }
  0x29   : > { %v732_v51 = vshrl.u32 %v2909_v23, 16  ;;  %v691_v52 = vrot.slane %v690_v45, 4  ;;  %v2950_v53 = vcombine.low %v2932_v36, %v2936_v41  ;;  %3517 = vst [vmem:[#allocation6_spill] sm:$0xff] %v2953_v54  ;;  %v2956_v55 = vld [vmem:[%s2860_s29 + $0x4c] sm:$0xf]  ;;  %v705_v59 = vrot.slane %v703_v46, 5 }
  0x2a   : > { %v672_v56 = vsel %vm2942_vm4, %v667_v47, %v671_v38  ;;  %v677_v57 = vrot.slane %v676_v48, 4  ;;  %v700_v58 = vor.u32 %v699_v40, %v695_v50  ;;  %v735_v60 = vshll.u32 %v2909_v23, 16  ;;  %v2969_v63 = vld [vmem:[%s2860_s29 + $0x2c] sm:$0x1]  ;;  %v2980_v12 = vld [vmem:[%s2860_s29 + $0x38] sm:$0x1] }
  0x2b   : > { %v745_v61 = vshrl.u32 %v2912_v24, 16  ;;  %v696_v1 = vsel %vm2942_vm4, %v691_v52, %v695_v50  ;;  %v2977_v11 = vcombine.low %v2953_v54, %v2956_v55  ;;  %v710_v13 = vrot.slane %v708_v25, 4  ;;  %v2986_v18 = vld [vmem:[%s2860_s29 + $0x54] sm:$0xf]  ;;  %v2992_v30 = vld [vmem:[%s2860_s29 + $0x58] sm:$0xf] }
  0x2c   : > { %2258 = vmatmul.mubr.msk.bf16.gmra.mrb[4].mxu1 %vm272_vm1, %v2928_v32  ;;  %v682_v0 = vsel %vm2942_vm4, %v677_v57, %v681_v49  ;;  %v701_v3 = vrot.slane %v700_v58, 4  ;;  %v713_v14 = vrot.slane %v711_v42, 5  ;;  %v717_v17 = vshll.u32 %v2894_v19, 16  ;;  %v3003_v42 = vld [vmem:[%s3502_s1 + $0x8] sm:$0xf] }
  0x2d   : > { %2261 = vmatprep.mubr.msk.bf16.mxu1 %vm272_vm1, %v2950_v53  ;;  %v2982_v5 = vcombine.low %v672_v56, %v682_v0  ;;  %v723_v27 = vrot.slane %v721_v43, 4  ;;  %v727_v28 = vshll.u32 %v2969_v63, 16  ;;  %v734_v29 = vrot.slane %v732_v51, 4  ;;  %v3017_v52 = vld [vmem:[%s2860_s29 + $0x60] sm:$0xf] }
  0x2e   : > { %v706_v21 = vsel %vm2942_vm4, %v701_v3, %v705_v59  ;;  %v714_v25 = vor.u32 %v713_v14, %v710_v13  ;;  %v719_v34 = vrot.slane %v717_v17, 5  ;;  %v737_v35 = vrot.slane %v735_v60, 5  ;;  %v3025_v60 = vld [vmem:[%s2860_s29 + $0x64] sm:$0xf] }
  0x2f   : > { %3518 = vst [vmem:[#allocation7_spill] sm:$0xff] %v2982_v5  ;;  %2325 = vmatprep.mubr.msk.bf16.mxu0 %vm272_vm1, %v2982_v5  ;;  %v2996_v33 = vcombine.low %v696_v1, %v706_v21  ;;  %v729_v37 = vrot.slane %v727_v28, 5  ;;  %v741_v38 = vshll.u32 %v2912_v24, 16  ;;  %v747_v39 = vrot.slane %v745_v61, 4  ;;  %v3031_v1 = vld [vmem:[%s2860_s29] sm:$0xf] }
  0x30   : > { %v751_v40 = vshll.u32 %v2980_v12, 16  ;;  %v715_v43 = vrot.slane %v714_v25, 4  ;;  %v724_v45 = vor.u32 %v723_v27, %v719_v34  ;;  %v738_v46 = vor.u32 %v737_v35, %v734_v29  ;;  %v3034_v3 = vld [vmem:[%s2860_s29 + $0x4] sm:$0xf] }
  0x31   : > { %3519 = vst [vmem:[#allocation8_spill] sm:$0xff] %v2996_v33  ;;  %2326 = vmatmul.mubr.msk.bf16.vlgmr.msra.gmra.mrb[0].mxu0 %vm272_vm1, %v2996_v33  ;;  %v3009_v47 = vcombine.low %v2986_v18, %v2992_v30  ;;  %v756_v48 = vshrl.u32 %v2932_v36, 16  ;;  %v759_v49 = vshll.u32 %v2932_v36, 16  ;;  %v769_v50 = vshrl.u32 %v2936_v41, 16  ;;  %v3042_v27 = vld [vmem:[%s2860_s29 + $0x44] sm:$0x1] }
  0x32   : > { %2342 = vmatpush3.bf16.msra.mxu0 %v1174_v62  ;;  %v743_v51 = vrot.slane %v741_v38, 5  ;;  %v780_v56 = vshrl.u32 %v2953_v54, 16  ;;  %v720_v57 = vsel %vm2942_vm4, %v715_v43, %v719_v34  ;;  %v725_v58 = vrot.slane %v724_v45, 4 }
  0x33   : > { %v739_v59 = vrot.slane %v738_v46, 4  ;;  %2550 = vmatprep.subr.msk.bf16.mxu0 %vm297_vm0, %v3003_v42  ;;  %v783_v61 = vshll.u32 %v2953_v54, 16  ;;  %v753_v0 = vrot.slane %v751_v40, 5  ;;  %v793_v13 = vshrl.u32 %v2956_v55, 16 }
  0x34   : > { %2262 = vmatmul.mubr.msk.bf16.gmra.mrb[8].mxu1 %vm272_vm1, %v2977_v11  ;;  %v748_v62 = vor.u32 %v747_v39, %v743_v51  ;;  %v730_v14 = vsel %vm2942_vm4, %v725_v58, %v729_v37  ;;  %v804_v17 = vshrl.u32 %v2986_v18, 16  ;;  %v807_v21 = vshll.u32 %v2986_v18, 16 }
  0x35   : > { %2265 = vmatprep.mubr.msk.bf16.mxu1 %vm272_vm1, %v3009_v47  ;;  %v3044_v28 = vcombine.low %v720_v57, %v730_v14  ;;  %v744_v29 = vsel %vm2942_vm4, %v739_v59, %v743_v51  ;;  %v3050_v34 = vcombine.low %v3017_v52, %v3025_v60  ;;  %v2026_v35 = vcombine.low %v3031_v1, %v3034_v3  ;;  %v3063_v59 = vld [vmem:[%s2860_s29 + $0x50] sm:$0x1] }
  0x36   : > { %v749_v25 = vrot.slane %v748_v62, 4  ;;  %v758_v37 = vrot.slane %v756_v48, 4  ;;  %v761_v38 = vrot.slane %v759_v49, 5  ;;  %v765_v39 = vshll.u32 %v2936_v41, 16  ;;  %3522 = vst [vmem:[#allocation11_spill] sm:$0xff] %v3063_v59 }
  0x37   : > { %3520 = vst [vmem:[#allocation9_spill] sm:$0xff] %v3050_v34  ;;  %2329 = vmatprep.mubr.msk.bf16.mxu0 %vm272_vm1, %v3044_v28  ;;  %v771_v43 = vrot.slane %v769_v50, 4  ;;  %v775_v45 = vshll.u32 %v3042_v27, 16  ;;  %v782_v46 = vrot.slane %v780_v56, 4  ;;  %v785_v48 = vrot.slane %v783_v61, 5 }
  0x38   : > { %v754_v40 = vsel %vm2942_vm4, %v749_v25, %v753_v0  ;;  %v762_v57 = vor.u32 %v761_v38, %v758_v37  ;;  %v767_v58 = vrot.slane %v765_v39, 5  ;;  %v817_v49 = vshrl.u32 %v2992_v30, 16  ;;  %v3529_v44 = vld [vmem:[#allocation8_spill] sm:$0xff] }
  0x39   : > { %v3060_v51 = vcombine.low %v744_v29, %v754_v40  ;;  %v789_v62 = vshll.u32 %v2956_v55, 16  ;;  %v795_v14 = vrot.slane %v793_v13, 4  ;;  %v828_v50 = vshrl.u32 %v3017_v52, 16 }
  0x3a   : > { %v831_v56 = vshll.u32 %v3017_v52, 16  ;;  %v772_v0 = vor.u32 %v771_v43, %v767_v58  ;;  %v786_v61 = vor.u32 %v785_v48, %v782_v46  ;;  %v841_v29 = vshrl.u32 %v3025_v60, 16 }
  0x3b   : > { %3521 = vst [vmem:[#allocation10_spill] sm:$0xff] %v3060_v51  ;;  %2330 = vmatmul.mubr.msk.bf16.gmra.mrb[4].mxu0 %vm272_vm1, %v3060_v51  ;;  %v791_v25 = vrot.slane %v789_v62, 5  ;;  %v799_v13 = vshll.u32 %v3063_v59, 16  ;;  %v813_v37 = vshll.u32 %v2992_v30, 16  ;;  %v763_v38 = vrot.slane %v762_v57, 4 }
  0x3c   : > { %2266 = vmatmul.mubr.msk.bf16.gmra.mrb[12].mxu1 %vm272_vm1, %v3050_v34  ;;  %2343 = vmatprep.mubr.msk.bf16.mxu0 %vm272_vm1, %v2996_v33  ;;  %v777_v39 = vrot.slane %v775_v45, 5  ;;  %v806_v40 = vrot.slane %v804_v17, 4  ;;  %v809_v4 = vrot.slane %v807_v21, 5  ;;  %v819_v48 = vrot.slane %v817_v49, 4  ;;  %v3082_v34 = vld [vmem:[%s2860_s29 + $0x5c] sm:$0x1] }
  0x3d   : > { %2271 = vmatprep.mubr.msk.bf16.mxu1 %vm272_vm1, %v2026_v35  ;;  %v773_v35 = vrot.slane %v772_v0, 4  ;;  %v796_v43 = vor.u32 %v795_v14, %v791_v25  ;;  %v3079_v46 = vrot.slane %v813_v37, 5  ;;  %v787_v5 = vrot.slane %v786_v61, 4  ;;  %v3089_v21 = vld [vmem:[%s2860_s29 + $0x6c] sm:$0xf] }
  0x3e   : > { %v830_v62 = vrot.slane %v828_v50, 4  ;;  %v833_v33 = vrot.slane %v831_v56, 5  ;;  %v1423_v59 = vsel %vm297_vm0, %v3003_v42, 0  ;;  %v801_v54 = vrot.slane %v799_v13, 5  ;;  %v3094_v14 = vld [vmem:[%s2860_s29 + $0x68] sm:$0x1] }
  0x3f   : > { %v797_v57 = vrot.slane %v796_v43, 4  ;;  %v517_v17 = vsel %vm297_vm0, %v2899_v20, 0  ;;  %v768_v45 = vsel %vm2942_vm4, %v763_v38, %v767_v58  ;;  %v837_v49 = vshll.u32 %v3025_v60, 16  ;;  %v3098_v50 = vld [vmem:[%s2860_s29 + $0x70] sm:$0xf] }
  0x40   : > { %v843_v0 = vrot.slane %v841_v29, 4  ;;  %v778_v42 = vsel %vm2942_vm4, %v773_v35, %v777_v39  ;;  %v810_v56 = vor.u32 %v809_v4, %v806_v40  ;;  %v820_v20 = vor.u32 %v819_v48, %v3079_v46  ;;  %v3109_v58 = vld [vmem:[%s3502_s1 + $0x14] sm:$0xf]  ;;  %v3121_v37 = vld [vmem:[%s3502_s1 + $0x4] sm:$0xf] }
  0x41   : > { %v823_v61 = vshll.u32 %v3082_v34, 16  ;;  %v834_v29 = vor.u32 %v833_v33, %v830_v62  ;;  %v839_v4 = vrot.slane %v837_v49, 5  ;;  %v852_v13 = vshrl.u32 %v3089_v21, 16 }
  0x42   : > { %v802_v38 = vsel %vm2942_vm4, %v797_v57, %v801_v54  ;;  %v847_v39 = vshll.u32 %v3094_v14, 16  ;;  %v861_v33 = vshll.u32 %v3098_v50, 16  ;;  %v821_v35 = vrot.slane %v820_v20, 4 }
  0x43   : > { %2344 = vmatmul.mubr.msk.bf16.vlgmr.msra.gmra.mrb[0].mxu0 %vm272_vm1, %v3044_v28  ;;  %v844_v40 = vor.u32 %v843_v0, %v839_v4  ;;  %v825_v43 = vrot.slane %v823_v61, 5  ;;  %v865_v48 = vshrl.u32 %v3098_v50, 16  ;;  %v854_v62 = vrot.slane %v852_v13, 4 }
  0x44   : > { %2272 = vmatmul.mubr.msk.bf16.vlgmr.msra.gmra.mrb[0].mxu1 %vm272_vm1, %v2873_v9  ;;  %v792_v9 = vsel %vm2942_vm4, %v787_v5, %v791_v25  ;;  %2360 = vmatpush3.bf16.msra.mxu0 %v1423_v59  ;;  %v855_v5 = vshll.u32 %v3089_v21, 16  ;;  %v3130_v25 = vcombine.low %v768_v45, %v778_v42  ;;  %v811_v59 = vrot.slane %v810_v56, 4  ;;  %v3142_v42 = vld [vmem:[%s2860_s29 + $0x74] sm:$0x1] }
  0x45   : > { %2275 = vmatprep.mubr.msk.bf16.mxu1 %vm272_vm1, %v2884_v15  ;;  %2347 = vmatprep.mubr.msk.bf16.mxu0 %vm272_vm1, %v3060_v51  ;;  %v3137_v54 = vcombine.low %v792_v9, %v802_v38  ;;  %v3139_v45 = vrot.slane %v861_v33, 5  ;;  %v835_v49 = vrot.slane %v834_v29, 4  ;;  %v849_v0 = vrot.slane %v847_v39, 5 }
  0x46   : > { %2288 = vmatpush3.bf16.msra.mxu1 %v517_v17  ;;  %2551 = vmatprep.subr.msk.bf16.mxu0 %vm297_vm0, %v3109_v58  ;;  %v857_v57 = vrot.slane %v855_v5, 5  ;;  %v845_v17 = vrot.slane %v844_v40, 4  ;;  %v867_v51 = vrot.slane %v865_v48, 4  ;;  %v816_v56 = vsel %vm2942_vm4, %v811_v59, %v3079_v46  ;;  %v3175_v40 = vld [vmem:[%s2860_s29 + $0x8] sm:$0x1]  ;;  %s2006_s29 = sshll.u32 %s185_s24, 6 }
  0x47   : > { %2546 = vmatprep.subr.msk.bf16.mxu1 %vm297_vm0, %v3121_v37  ;;  %v826_v20 = vsel %vm2942_vm4, %v821_v35, %v825_v43  ;;  %v871_v29 = vshll.u32 %v3142_v42, 16  ;;  %v2085_v13 = vrot.slane %v2887_v16, 9  ;;  %v840_v46 = vsel %vm2942_vm4, %v835_v49, %v839_v4  ;;  %s3391_s4 = scalar_lea.vmem [#allocation2], %s2006_s29 }
  0x48   : > { %v858_v61 = vor.u32 %v857_v57, %v854_v62  ;;  %v868_v9 = vor.u32 %v867_v51, %v3139_v45  ;;  %v850_v38 = vsel %vm2942_vm4, %v845_v17, %v849_v0  ;;  %v1325_v39 = vrot.slane %v2894_v19, 5  ;;  %s1923_s7 = sshll.u32 %s3391_s4, 4  ;;  %s3439_s7 = int_to_ptr.vmem [resolvable:$true] %s1923_s7 }
  0x49   : > { %v1304_v51 = vrot.slane %v3034_v3, 5  ;;  %v1328_v16 = vrot.slane %v2969_v63, 5  ;;  %v3172_v33 = vcombine.low %v816_v56, %v826_v20  ;;  %v2082_v4 = vrot.slane %v3031_v1, 9  ;;  %s2637_s20 = scalar_lea.vmem %s3439_s7, 1024  ;;  %p2644_p2 = scmp.lt.s32.totalorder %s3439_s7, %s2642_s27 }
  0x4a   : > { %v1326_v59 = vsel %vm3166_vm7, %v2085_v13, %v1325_v39  ;;  %v1327_v35 = vrot.slane %v1325_v39, 4  ;;  %v3180_v19 = vcombine.low %v840_v46, %v850_v38  ;;  %v859_v43 = vrot.slane %v858_v61, 4  ;;  %p2638_p13 = scmp.ne.s32.totalorder %s3439_s7, %s2637_s20  ;;  %p2645_p4 = scmp.lt.s32.totalorder %s2643_s28, %s2637_s20 }
  0x4b   : > { %2348 = vmatmul.mubr.msk.bf16.gmra.mrb[4].mxu0 %vm272_vm1, %v3130_v25  ;;  %v869_v48 = vrot.slane %v868_v9, 4  ;;  %v873_v62 = vrot.slane %v871_v29, 5  ;;  %v2087_v63 = vrot.slane %v2932_v36, 9  ;;  %v1339_v49 = vrot.slane %v2936_v41, 5 }
  0x4c   : > { %2276 = vmatmul.mubr.msk.bf16.gmra.mrb[4].mxu1 %vm272_vm1, %v2906_v22  ;;  %2351 = vmatprep.mubr.msk.bf16.mxu0 %vm272_vm1, %v3137_v54  ;;  %v1329_v57 = vsel %vm3166_vm7, %v1327_v35, %v1328_v16  ;;  %v1342_v17 = vrot.slane %v3042_v27, 5  ;;  %v1306_v0 = vrot.slane %v1304_v51, 4  ;;  %v1307_v56 = vrot.slane %v3175_v40, 5  ;;  %p2639_p0 = pnand %p2638_p13, %p2807_p3  ;;  %p2646_p5 = por %p2645_p4, %p2644_p2 }
  0x4d   : > { %2279 = vmatprep.mubr.msk.bf16.mxu1 %vm272_vm1, %v2928_v32  ;;  %v3188_v20 = vcombine.low %v1326_v59, %v1329_v57  ;;  %v1311_v13 = vrot.slane %v2866_v7, 5  ;;  %v1340_v61 = vsel %vm3166_vm7, %v2087_v63, %v1339_v49  ;;  %v1341_v9 = vrot.slane %v1339_v49, 4 }
  0x4e   : > { %v1305_v36 = vsel %vm3166_vm7, %v2082_v4, %v1304_v51  ;;  %v1318_v41 = vrot.slane %v2876_v10, 5  ;;  %v2089_v7 = vrot.slane %v2986_v18, 9  ;;  %v1353_v27 = vrot.slane %v2992_v30, 5  ;;  %p2640_p1 = pneg %p2639_p0 }
  0x4f   : > { %v864_v29 = vsel %vm2942_vm4, %v859_v43, %v3139_v45  ;;  %v874_v46 = vsel %vm2942_vm4, %v869_v48, %v873_v62  ;;  %v1343_v38 = vsel %vm3166_vm7, %v1341_v9, %v1342_v17  ;;  %v1356_v39 = vrot.slane %v3082_v34, 5 }
  0x50   : > { %v1308_v10 = vsel %vm3166_vm7, %v1306_v0, %v1307_v56  ;;  %v3216_v18 = vcombine.low %v1340_v61, %v1343_v38  ;;  %v1354_v30 = vsel %vm3166_vm7, %v2089_v7, %v1353_v27  ;;  %v1355_v51 = vrot.slane %v1353_v27, 4  ;;  %p2647_p6 = pnand %p2646_p5, %p2640_p1 }
  0x51   : > { %v2083_v16 = vrot.slane %v2863_v6, 9  ;;  %v1313_v45 = vrot.slane %v1311_v13, 4  ;;  %v1314_v4 = vrot.slane %v2916_v26, 5  ;;  %v2084_v59 = vrot.slane %v2869_v8, 9 }
  0x52   : > { %v2073_v35 = vcombine.low %v864_v29, %v874_v46  ;;  %v1357_v34 = vsel %vm3166_vm7, %v1355_v51, %v1356_v39  ;;  %v2090_v43 = vrot.slane %v3017_v52, 9  ;;  %v1360_v48 = vrot.slane %v3025_v60, 5  ;;  %v2119_v39 = vld [vmem:[%s3502_s1 + $0x20] sm:$0xf] }
  0x53   : > { %2352 = vmatmul.mubr.msk.bf16.gmra.mrb[8].mxu0 %vm272_vm1, %v3172_v33  ;;  %v2093_v62 = vcombine.low %v1305_v36, %v1308_v10  ;;  %v1321_v57 = vrot.slane %v2922_v31, 5  ;;  %v3228_v63 = vcombine.low %v1354_v30, %v1357_v34  ;;  %v1363_v6 = vrot.slane %v3094_v14, 5 }
  0x54   : > { %2280 = vmatmul.mubr.msk.bf16.gmra.mrb[8].mxu1 %vm272_vm1, %v2950_v53  ;;  %2355 = vmatprep.mubr.msk.bf16.mxu0 %vm272_vm1, %v3180_v19  ;;  %v1320_v49 = vrot.slane %v1318_v41, 4  ;;  %v1361_v26 = vsel %vm3166_vm7, %v2090_v43, %v1360_v48  ;;  %v1362_v8 = vrot.slane %v1360_v48, 4  ;;  %v2091_v17 = vrot.slane %v3089_v21, 9  ;;  %v3526_v43 = vld [vmem:[#allocation11_spill] sm:$0xff] }
  0x55   : > { %2283 = vmatprep.mubr.msk.bf16.mxu1 %vm272_vm1, %v2977_v11  ;;  %v1367_v52 = vrot.slane %v3098_v50, 5  ;;  %v1312_v60 = vsel %vm3166_vm7, %v2083_v16, %v1311_v13  ;;  %v1370_v14 = vrot.slane %v3142_v42, 5  ;;  %v1315_v0 = vsel %vm3166_vm7, %v1313_v45, %v1314_v4 }
  0x56   : > { %v1364_v31 = vsel %vm3166_vm7, %v1362_v8, %v1363_v6  ;;  %v1332_v56 = vrot.slane %v2912_v24, 5  ;;  %v1322_v9 = vsel %vm3166_vm7, %v1320_v49, %v1321_v57  ;;  %v2094_v36 = vcombine.low %v1312_v60, %v1315_v0 }
  0x57   : > { %v3249_v61 = vcombine.low %v1361_v26, %v1364_v31  ;;  %v3253_v13 = vsel %vm3166_vm7, %v2091_v17, %v1367_v52  ;;  %v1369_v42 = vrot.slane %v1367_v52, 4  ;;  %v2086_v7 = vrot.slane %v2909_v23, 9  ;;  %v3528_v52 = vld [vmem:[#allocation7_spill] sm:$0xff] }
  0x58   : > { %v1334_v29 = vrot.slane %v1332_v56, 4  ;;  %v1335_v46 = vrot.slane %v2980_v12, 5  ;;  %v926_v23 = vsel %vm297_vm0, %v3121_v37, 0  ;;  %v636_v10 = vshrl.u32 %v3031_v1, 16 }
  0x59   : > { %v3262_v27 = vsel %vm3166_vm7, %v1369_v42, %v1370_v14  ;;  %v639_v12 = vshll.u32 %v3031_v1, 16  ;;  %v645_v30 = vshll.u32 %v3034_v3, 16  ;;  %v1346_v1 = vrot.slane %v2956_v55, 5  ;;  %v3383_v14 = vld [vmem:[%s3503_s2] ss:$0 sm:$0xff] }
  0x5a   : > { %v2120_v38 = vcombine.low %v3253_v13, %v3262_v27  ;;  %v1336_v37 = vsel %vm3166_vm7, %v1334_v29, %v1335_v46  ;;  %v638_v51 = vrot.slane %v636_v10, 4  ;;  %v1349_v48 = vrot.slane %v3526_v43, 5 }
  0x5b   : > { %2356 = vmatmul.mubr.msk.bf16.gmra.mrb[12].mxu0 %vm272_vm1, %v2073_v35  ;;  %v641_v16 = vrot.slane %v639_v12, 5  ;;  %v647_v45 = vrot.slane %v645_v30, 5  ;;  %v1348_v34 = vrot.slane %v1346_v1, 4  ;;  %v2036_v8 = vcombine.low %v3089_v21, %v3098_v50  ;;  %v3530_v21 = vld [vmem:[#allocation5_spill] sm:$0xff]  ;;  %v3531_v50 = vld [vmem:[#allocation10_spill] sm:$0xff] }
  0x5c   : > { %2284 = vmatmul.mubr.msk.bf16.gmra.mrb[12].mxu1 %vm272_vm1, %v3009_v47  ;;  %2361 = vmatprep.mubr.msk.bf16.mxu0 %vm272_vm1, %v2093_v62 }
  0x5d   : > { %2289 = vmatprep.mubr.msk.bf16.mxu1 %vm272_vm1, %v2884_v15  ;;  %v1319_v15 = vsel %vm3166_vm7, %v2084_v59, %v1318_v41  ;;  %v1547_v41 = vsel %vm297_vm0, %v3109_v58, 0  ;;  %v649_v58 = vshrl.u32 %v3034_v3, 16  ;;  %v3525_v59 = vld [vmem:[#allocation6_spill] sm:$0xff]  ;;  %v655_v3 = vshll.u32 %v3175_v40, 16 }
  0x5e   : > { %v3264_v24 = vcombine.low %v1319_v15, %v1322_v9  ;;  %v2088_v35 = vrot.slane %v3525_v59, 9  ;;  %v1350_v57 = vsel %vm3166_vm7, %v1348_v34, %v1349_v48 }
  0x5f   : > { %v651_v4 = vrot.slane %v649_v58, 4  ;;  %v657_v26 = vrot.slane %v655_v3, 5 }
  0x60   : > { %v1347_v62 = vsel %vm3166_vm7, %v2088_v35, %v1346_v1 }
  0x61   : > { %v652_v55 = vor.u32 %v651_v4, %v647_v45  ;;  %v2099_v6 = vcombine.low %v1347_v62, %v1350_v57 }
  0x63   : > { %2362 = vmatmul.mubr.msk.bf16.vlgmr.msra.gmra.mrb[0].mxu0 %vm272_vm1, %v2094_v36  ;;  %v653_v49 = vrot.slane %v652_v55, 4 }
  0x64   : > { %2290 = vmatmul.mubr.msk.bf16.vlgmr.msra.gmra.mrb[0].mxu1 %vm272_vm1, %v2906_v22  ;;  %2378 = vmatpush3.bf16.msra.mxu0 %v1547_v41  ;;  %v1333_v22 = vsel %vm3166_vm7, %v2086_v7, %v1332_v56 }
  0x65   : > { %2293 = vmatprep.mubr.msk.bf16.mxu1 %vm272_vm1, %v2928_v32  ;;  %2365 = vmatprep.mubr.msk.bf16.mxu0 %vm272_vm1, %v3264_v24  ;;  %v2097_v32 = vcombine.low %v1333_v22, %v1336_v37  ;;  %v658_v5 = vsel %vm2942_vm4, %v653_v49, %v657_v26 }
  0x66   : > { %2306 = vmatpush3.bf16.msra.mxu1 %v926_v23  ;;  %2552 = vmatprep.subr.msk.bf16.mxu0 %vm297_vm0, %v2119_v39 }
  0x67   : > { %2548 = vmatprep.subr.msk.bf16.mxu1 %vm297_vm0, %v2837_v2  ;;  %v642_v2 = vor.u32 %v641_v16, %v638_v51 }
  0x6b   : > { %2366 = vmatmul.mubr.msk.bf16.gmra.mrb[4].mxu0 %vm272_vm1, %v3188_v20 }
  0x6c   : > { %2294 = vmatmul.mubr.msk.bf16.gmra.mrb[4].mxu1 %vm272_vm1, %v2950_v53  ;;  %2369 = vmatprep.mubr.msk.bf16.mxu0 %vm272_vm1, %v2097_v32  ;;  %v643_v53 = vrot.slane %v642_v2, 4 }
  0x6d   : > { %2297 = vmatprep.mubr.msk.bf16.mxu1 %vm272_vm1, %v2977_v11  ;;  %v3527_v11 = vld [vmem:[#allocation9_spill] sm:$0xff] }
  0x6e   : > { %v648_v40 = vsel %vm2942_vm4, %v643_v53, %v647_v45 }
  0x6f   : > { %v2046_v17 = vcombine.low %v648_v40, %v658_v5 }
  0x73   : > { %2370 = vmatmul.mubr.msk.bf16.gmra.mrb[8].mxu0 %vm272_vm1, %v3216_v18 }
  0x74   : > { %2298 = vmatmul.mubr.msk.bf16.gmra.mrb[8].mxu1 %vm272_vm1, %v3009_v47  ;;  %2373 = vmatprep.mubr.msk.bf16.mxu0 %vm272_vm1, %v2099_v6  ;;  %v1671_v47 = vsel %vm297_vm0, %v2119_v39, 0 }
  0x75   : > { %2301 = vmatprep.mubr.msk.bf16.mxu1 %vm272_vm1, %v3527_v11 }
  0x7b   : > { %2374 = vmatmul.mubr.msk.bf16.gmra.mrb[12].mxu0 %vm272_vm1, %v3228_v63 }
  0x7c   : > { %2302 = vmatmul.mubr.msk.bf16.gmra.mrb[12].mxu1 %vm272_vm1, %v2036_v8  ;;  %2379 = vmatprep.mubr.msk.bf16.mxu0 %vm272_vm1, %v2094_v36 }
  0x7d   : > { %2307 = vmatprep.mubr.msk.bf16.mxu1 %vm272_vm1, %v2046_v17 }
  0x83   : > { %2380 = vmatmul.mubr.msk.bf16.vlgmr.msra.gmra.mrb[0].mxu0 %vm272_vm1, %v3264_v24 }
  0x84   : > { %2308 = vmatmul.mubr.msk.bf16.vlgmr.msra.gmra.mrb[0].mxu1 %vm272_vm1, %v3528_v52  ;;  %2396 = vmatpush3.bf16.msra.mxu0 %v1671_v47 }
  0x85   : > { %2311 = vmatprep.mubr.msk.bf16.mxu1 %vm272_vm1, %v3529_v44  ;;  %2383 = vmatprep.mubr.msk.bf16.mxu0 %vm272_vm1, %v3188_v20 }
  0x86   : > { %2414 = vmatpush3.bf16.msra.mxu1 %v3530_v21 }
  0x8b   : > { %2384 = vmatmul.mubr.msk.bf16.gmra.mrb[4].mxu0 %vm272_vm1, %v2097_v32 }
  0x8c   : > { %2312 = vmatmul.mubr.msk.bf16.gmra.mrb[4].mxu1 %vm272_vm1, %v3044_v28  ;;  %2387 = vmatprep.mubr.msk.bf16.mxu0 %vm272_vm1, %v3216_v18 }
  0x8d   : > { %2315 = vmatprep.mubr.msk.bf16.mxu1 %vm272_vm1, %v3531_v50 }
  0x93   : > { %2388 = vmatmul.mubr.msk.bf16.gmra.mrb[8].mxu0 %vm272_vm1, %v2099_v6 }
  0x94   : > { %2316 = vmatmul.mubr.msk.bf16.gmra.mrb[8].mxu1 %vm272_vm1, %v3130_v25  ;;  %2391 = vmatprep.mubr.msk.bf16.mxu0 %vm272_vm1, %v3228_v63 }
  0x95   : > { %2319 = vmatprep.mubr.msk.bf16.mxu1 %vm272_vm1, %v3137_v54 }
  0x9b   : > { %2392 = vmatmul.mubr.msk.bf16.gmra.mrb[12].mxu0 %vm272_vm1, %v3249_v61 }
  0x9c   : > { %2320 = vmatmul.mubr.msk.bf16.gmra.mrb[12].mxu1 %vm272_vm1, %v3172_v33  ;;  %2397 = vmatprep.mubr.msk.bf16.mxu0 %vm272_vm1, %v3264_v24 }
  0x9d   : > { %2333 = vmatprep.mubr.msk.bf16.mxu1 %vm272_vm1, %v3130_v25 }
  0xa3   : > { %2398 = vmatmul.mubr.msk.bf16.vlgmr.msra.gmra.mrb[0].mxu0 %vm272_vm1, %v3188_v20 }
  0xa4   : > { %2334 = vmatmul.mubr.msk.bf16.vlgmr.msra.gmra.mrb[8].mxu1 %vm272_vm1, %v3137_v54  ;;  %2401 = vmatprep.mubr.msk.bf16.mxu0 %vm272_vm1, %v2097_v32 }
  0xa5   : > { %2337 = vmatprep.mubr.msk.bf16.mxu1 %vm272_vm1, %v3172_v33 }
  0xab   : > { %2402 = vmatmul.mubr.msk.bf16.gmra.mrb[4].mxu0 %vm272_vm1, %v3216_v18 }
  0xac   : > { %2338 = vmatmul.mubr.msk.bf16.gmra.mrb[12].mxu1 %vm272_vm1, %v3180_v19  ;;  %2405 = vmatprep.mubr.msk.bf16.mxu0 %vm272_vm1, %v2099_v6 }
  0xb3   : > { %2406 = vmatmul.mubr.msk.bf16.gmra.mrb[8].mxu0 %vm272_vm1, %v3228_v63 }
  0xb4   : > { %2409 = vmatprep.mubr.msk.bf16.mxu0 %vm272_vm1, %v3249_v61 }
  0xbb   : > { %2410 = vmatmul.mubr.msk.bf16.gmra.mrb[12].mxu0 %vm272_vm1, %v2120_v38 }
 0x157   : > { %v2309_v28 = vpop.f32.mrb[0].mxu1 }
 0x158   : > { %v962_v25 = vpop.f32.mrb[1].mxu1 }
 0x159   : > { %v2310_v54 = vpop.f32.mrb[2].mxu1 }
 0x15a   : > { %v965_v33 = vpop.f32.mrb[3].mxu1 }
 0x15f   : > { %v2313_v19 = vpop.f32.mrb[4].mxu1 }
 0x160   : > { %v978_v20 = vpop.f32.mrb[5].mxu1 }
 0x161   : > { %v2314_v18 = vpop.f32.mrb[6].mxu1 }
 0x162   : > { %v981_v60 = vpop.f32.mrb[7].mxu1 }
 0x176   : > { %v2399_v63 = vpop.f32.mrb[0].mxu0 }
 0x177   : > { %v2335_v31 = vpop.f32.mrb[8].mxu1  ;;  %v2415_v56 = vadd.f32 %v2399_v63, %v2309_v28  ;;  %v1707_v61 = vpop.f32.mrb[1].mxu0 }
 0x178   : > { %v1118_v0 = vpop.f32.mrb[9].mxu1  ;;  %v2416_v15 = vadd.f32 %v1707_v61, %v962_v25  ;;  %v2400_v9 = vpop.f32.mrb[2].mxu0 }
 0x179   : > { %v2336_v13 = vpop.f32.mrb[10].mxu1  ;;  %v1795_v36 = vadd.f32 %v2415_v56, %v3383_v14  ;;  %v2417_v7 = vadd.f32 %v2400_v9, %v2310_v54  ;;  %v1710_v27 = vpop.f32.mrb[3].mxu0 }
 0x17a   : > { %v1121_v42 = vpop.f32.mrb[11].mxu1  ;;  %v1793_v24 = vadd.f32 %v2416_v15, %v3383_v14  ;;  %v2418_v29 = vadd.f32 %v1710_v27, %v965_v33 }
 0x17b   : > { %v1811_v46 = vmax.f32 %v1795_v36, 0.0  ;;  %v1796_v38 = vadd.f32 %v2417_v7, %v3383_v14 }
 0x17c   : > { %v1809_v41 = vmax.f32 %v1793_v24, 0.0  ;;  %v1794_v23 = vadd.f32 %v2418_v29, %v3383_v14 }
 0x17d   : > { %v2155_v39 = vpack.c.bf16 %v1811_v46, %v1811_v46  ;;  %v1812_v10 = vmax.f32 %v1796_v38, 0.0 }
 0x17e   : > { %v2153_v58 = vpack.c.bf16 %v1809_v41, %v1809_v41  ;;  %v1810_v22 = vmax.f32 %v1794_v23, 0.0  ;;  %v2403_v37 = vpop.f32.mrb[4].mxu0 }
 0x17f   : > { %v2339_v12 = vpop.f32.mrb[12].mxu1  ;;  %1892 = vst.msk [vmem:[%s3391_s4 + $0x8] sm:$0xf] %vm1889_vm8, %v2155_v39  ;;  %v2156_v1 = vpack.c.bf16 %v1812_v10, %v1812_v10  ;;  %v2419_v32 = vadd.f32 %v2403_v37, %v2313_v19  ;;  %v1723_v51 = vpop.f32.mrb[5].mxu0 }
 0x180   : > { %v1134_v30 = vpop.f32.mrb[13].mxu1  ;;  %1890 = vst.msk [vmem:[%s3391_s4] sm:$0xf] %vm1889_vm8, %v2153_v58  ;;  %v2154_v45 = vpack.c.bf16 %v1810_v22, %v1810_v22  ;;  %v2420_v4 = vadd.f32 %v1723_v51, %v978_v20  ;;  %v2404_v59 = vpop.f32.mrb[6].mxu0 }
 0x181   : > { %v2340_v16 = vpop.f32.mrb[14].mxu1  ;;  %1893 = vst.msk [vmem:[%s3391_s4 + $0xc] sm:$0xf] %vm1889_vm8, %v2156_v1  ;;  %v1799_v34 = vadd.f32 %v2419_v32, %v3383_v14  ;;  %v2421_v43 = vadd.f32 %v2404_v59, %v2314_v18  ;;  %v1726_v48 = vpop.f32.mrb[7].mxu0 }
 0x182   : > { %v1137_v35 = vpop.f32.mrb[15].mxu1  ;;  %1891 = vst.msk [vmem:[%s3391_s4 + $0x4] sm:$0xf] %vm1889_vm8, %v2154_v45  ;;  %v1797_v2 = vadd.f32 %v2420_v4, %v3383_v14  ;;  %v2422_v55 = vadd.f32 %v1726_v48, %v981_v60 }
 0x183   : > { %v1815_v3 = vmax.f32 %v1799_v34, 0.0  ;;  %v1800_v62 = vadd.f32 %v2421_v43, %v3383_v14 }
 0x184   : > { %v1813_v57 = vmax.f32 %v1797_v2, 0.0  ;;  %v1798_v6 = vadd.f32 %v2422_v55, %v3383_v14 }
 0x185   : > { %v2159_v53 = vpack.c.bf16 %v1815_v3, %v1815_v3  ;;  %v1816_v49 = vmax.f32 %v1800_v62, 0.0 }
 0x186   : > { %v2157_v26 = vpack.c.bf16 %v1813_v57, %v1813_v57  ;;  %v1814_v11 = vmax.f32 %v1798_v6, 0.0  ;;  %v2407_v40 = vpop.f32.mrb[8].mxu0 }
 0x187   : > { %1896 = vst.msk [vmem:[%s3391_s4 + $0x18] sm:$0xf] %vm1889_vm8, %v2159_v53  ;;  %v2160_v5 = vpack.c.bf16 %v1816_v49, %v1816_v49  ;;  %v2423_v8 = vadd.f32 %v2407_v40, %v2335_v31  ;;  %v1739_v17 = vpop.f32.mrb[9].mxu0 }
 0x188   : > { %1894 = vst.msk [vmem:[%s3391_s4 + $0x10] sm:$0xf] %vm1889_vm8, %v2157_v26  ;;  %v2158_v47 = vpack.c.bf16 %v1814_v11, %v1814_v11  ;;  %v2424_v52 = vadd.f32 %v1739_v17, %v1118_v0  ;;  %v2408_v44 = vpop.f32.mrb[10].mxu0 }
 0x189   : > { %1897 = vst.msk [vmem:[%s3391_s4 + $0x1c] sm:$0xf] %vm1889_vm8, %v2160_v5  ;;  %v1803_v21 = vadd.f32 %v2423_v8, %v3383_v14  ;;  %v2425_v50 = vadd.f32 %v2408_v44, %v2336_v13  ;;  %v1742_v28 = vpop.f32.mrb[11].mxu0 }
 0x18a   : > { %1895 = vst.msk [vmem:[%s3391_s4 + $0x14] sm:$0xf] %vm1889_vm8, %v2158_v47  ;;  %v1801_v25 = vadd.f32 %v2424_v52, %v3383_v14  ;;  %v2426_v54 = vadd.f32 %v1742_v28, %v1121_v42 }
 0x18b   : > { %v1819_v33 = vmax.f32 %v1803_v21, 0.0  ;;  %v1804_v19 = vadd.f32 %v2425_v50, %v3383_v14 }
 0x18c   : > { %v1817_v20 = vmax.f32 %v1801_v25, 0.0  ;;  %v1802_v18 = vadd.f32 %v2426_v54, %v3383_v14 }
 0x18d   : > { %v2163_v60 = vpack.c.bf16 %v1819_v33, %v1819_v33  ;;  %v1820_v31 = vmax.f32 %v1804_v19, 0.0 }
 0x18e   : > { %v2161_v63 = vpack.c.bf16 %v1817_v20, %v1817_v20  ;;  %v1818_v0 = vmax.f32 %v1802_v18, 0.0  ;;  %v2411_v56 = vpop.f32.mrb[12].mxu0 }
 0x18f   : > { %1900 = vst.msk [vmem:[%s3391_s4 + $0x28] sm:$0xf] %vm1889_vm8, %v2163_v60  ;;  %v2164_v61 = vpack.c.bf16 %v1820_v31, %v1820_v31  ;;  %v2427_v13 = vadd.f32 %v2411_v56, %v2339_v12  ;;  %v1755_v15 = vpop.f32.mrb[13].mxu0 }
 0x190   : > { %1898 = vst.msk [vmem:[%s3391_s4 + $0x20] sm:$0xf] %vm1889_vm8, %v2161_v63  ;;  %v2162_v9 = vpack.c.bf16 %v1818_v0, %v1818_v0  ;;  %v2428_v42 = vadd.f32 %v1755_v15, %v1134_v30  ;;  %v2412_v36 = vpop.f32.mrb[14].mxu0 }
 0x191   : > { %1901 = vst.msk [vmem:[%s3391_s4 + $0x2c] sm:$0xf] %vm1889_vm8, %v2164_v61  ;;  %v1807_v7 = vadd.f32 %v2427_v13, %v3383_v14  ;;  %v2429_v27 = vadd.f32 %v2412_v36, %v2340_v16  ;;  %v1758_v24 = vpop.f32.mrb[15].mxu0 }
 0x192   : > { %1899 = vst.msk [vmem:[%s3391_s4 + $0x24] sm:$0xf] %vm1889_vm8, %v2162_v9  ;;  %v1805_v29 = vadd.f32 %v2428_v42, %v3383_v14  ;;  %v2430_v46 = vadd.f32 %v1758_v24, %v1137_v35 }
 0x193   : > { %v1823_v38 = vmax.f32 %v1807_v7, 0.0  ;;  %v1808_v41 = vadd.f32 %v2429_v27, %v3383_v14 }
 0x194   : > { %v1821_v23 = vmax.f32 %v1805_v29, 0.0  ;;  %v1806_v39 = vadd.f32 %v2430_v46, %v3383_v14 }
 0x195   : > { %v2167_v10 = vpack.c.bf16 %v1823_v38, %v1823_v38  ;;  %v1824_v12 = vmax.f32 %v1808_v41, 0.0 }
 0x196   : > { %v2165_v58 = vpack.c.bf16 %v1821_v23, %v1821_v23  ;;  %v1822_v22 = vmax.f32 %v1806_v39, 0.0 }
 0x197   : > { %1904 = vst.msk [vmem:[%s3391_s4 + $0x38] sm:$0xf] %vm1889_vm8, %v2167_v10  ;;  %v2168_v37 = vpack.c.bf16 %v1824_v12, %v1824_v12 }
 0x198   : > { %1902 = vst.msk [vmem:[%s3391_s4 + $0x30] sm:$0xf] %vm1889_vm8, %v2165_v58  ;;  %v2166_v14 = vpack.c.bf16 %v1822_v22, %v1822_v22 }
 0x199   : > { %1905 = vst.msk [vmem:[%s3391_s4 + $0x3c] sm:$0xf] %vm1889_vm8, %v2168_v37 }
 0x19a   : > { %1903 = vst.msk [vmem:[%s3391_s4 + $0x34] sm:$0xf] %vm1889_vm8, %v2166_v14 }
 0x19b   : > { %2650 = shalt.err (!%p2647_p6)
}
 0x19c   : > { %s2651_s24 = scalar_lea.hbm %s3437_s10, 1024  ;;  %s2655_s5 = scalar_lea.hbm %s3504_s3, 4096 }
 0x19d   : > { %p2652_p7 = scmp.ne.s32.totalorder %s3437_s10, %s2651_s24  ;;  %p2656_p11 = scmp.lt.u32.totalorder %s3437_s10, %s3504_s3 }
 0x19e   : > { %p2657_p12 = scmp.lt.u32.totalorder %s2655_s5, %s2651_s24  ;;  %p2659_p0 = scmp.lt.u32.totalorder %s2651_s24, %s3437_s10 }
 0x19f   : > { %p2653_p9 = pnand %p2652_p7, %p2807_p3 }
 0x1a0   : > { %p2658_p13 = por %p2657_p12, %p2656_p11 }
 0x1a1   : > { %p2654_p10 = pneg %p2653_p9 }
 0x1a2   : > { %p2660_p1 = por %p2659_p0, %p2658_p13 }
 0x1a4   : > { %p2661_p2 = pnand %p2660_p1, %p2654_p10 }
 0x1a6   : > { %2664 = shalt.err (!%p2661_p2)
}
 0x1a7   : > { %s2734_s16 = smov 64   ;;  %s2735_s8 = smov 4  }
 0x1a8   : > { %2554 = dma.vmem_to_hbm [thread:$0]  (%p2807_p3), %s3439_s7, 1024, %s3437_s10, %s3449_s11, %s2734_s16, %s2734_s16, %s2735_s8  }
 0x1a9 PF: > { %p2560_p4 = scmp.ge.s32.totalorder %s2731_s19, 2  ;;  %s1938_s9 = sand.u32 1, %s2703_s12  }
 0x1aa   : > { %s1939_s20 = scalar_lea.sflag [#allocation3], %s1938_s9 }
 0x1ab   : > { %p2557_p5 = pnand %p2560_p4, %p2816_p8 }
 0x1ad   : > { %2698 = dma.done.wait (!%p2557_p5), %s1939_s20, 1024  }
 0x1ae   : > { %2700 = vsyncadd (!%p2557_p5), %s1939_s20, 4294966272  ;;  %s16_s19 = sadd.s32 1, %s2731_s19   ;;  %s3532_s12 = smov %s2707_s13 }
 0x1af   : > { %p13_p6 = scmp.ge.s32.totalorder %s16_s19, 6   ;;  %s3533_s13 = smov %s2711_s14 }
 0x1b0   : > { %s3534_s14 = smov %s2825_s30  ;;  %s3535_s15 = smov %s2723_s17 }
 0x1b1   : > { %s3536_s16 = smov %s2727_s18  ;;  %s3537_s17 = smov %s3540_s22 }
 0x1b2   : > { %s3538_s18 = smov %s3544_s23  ;;  %15 = sbr.rel (!%p13_p6) target bundleno = 5 (0x5), region = 75 }
 0x1b9   :  { %1944 = vsyncpa [#allocation3], 1 }
 0x1ba   :  { %1946 = vsyncpa [#allocation3 + $0x1], 1 }

</bundles_post_ra>
